<compile_context>
chip_gen: v7x
topology: tpu7x:2x2x1
jax: 0.10.0
libtpu: 0.0.40
codegen_flags: <defaults>
</compile_context>

<pallas_src>
import jax
import jax.numpy as jnp
from jax.experimental import pallas as pl
from jax.experimental.pallas import tpu as pltpu


def _make_nll_kernel(n_valid):
    """Kernel factory closing over the true (unpadded) batch size."""

    def kernel(pred_ref, tgt_ref, out_ref):
        # pred_ref: (TN, C) native dtype in VMEM
        # tgt_ref : (TN, 1) int32 in VMEM
        # out_ref : (1, 128) f32 in VMEM  (per-tile partial NLL sum, lane-dense)
        x = pred_ref[...].astype(jnp.float32)                      # upcast in VMEM
        tn, c = x.shape

        # numerically stable log-sum-exp along the class (lane) axis
        m = jnp.max(x, axis=1, keepdims=True)                      # (TN, 1)
        s = jnp.sum(jnp.exp(x - m), axis=1, keepdims=True)         # (TN, 1)
        lse = m + jnp.log(s)                                       # (TN, 1)

        # gather x[i, targets[i]]: (1, C) iota broadcast-compared against the
        # (TN, 1) targets -> no full (TN, C) iota materialized, no one-hot.
        col = jax.lax.broadcasted_iota(jnp.int32, (1, c), 1)       # (1, C)
        picked = jnp.sum(jnp.where(col == tgt_ref[...], x, 0.0),
                         axis=1, keepdims=True)                    # (TN, 1)

        nll = lse - picked                                         # (TN, 1)

        # Mask rows past the true batch size (ragged last tile): the OOB block
        # data is undefined (possibly Inf/NaN) and must not reach the sum.
        row0 = pl.program_id(0) * tn
        rows = row0 + jax.lax.broadcasted_iota(jnp.int32, (tn, 1), 0)
        nll = jnp.where(rows < n_valid, nll, 0.0)

        part = jnp.sum(nll)                                        # scalar
        out_ref[...] = jnp.full(out_ref.shape, part, dtype=jnp.float32)

    return kernel


def _vmem_capacity_bytes():
    """Physical VMEM of the current TPU generation (conservative fallback)."""
    try:
        info = pltpu.get_tpu_info()
        cap = int(getattr(info, "vmem_capacity_bytes", 0))
        if cap > 0:
            return cap
    except Exception:
        pass
    return 64 * 1024 * 1024  # v7x per-TC size: safe lower bound everywhere


def _choose_tile_n(n, c, dtype):
    """Rows per tile + explicit scoped-VMEM limit, sized per TPU generation."""
    itemsize = jnp.dtype(dtype).itemsize
    sub = max(8, 32 // max(1, itemsize))       # min sublane tile: 8/16/32
    cap = _vmem_capacity_bytes()
    vmem_limit = int(cap * 3 // 4)             # e.g. 96 MiB v5e/v6e, 48 MiB v7x

    # Peak per-step VMEM ~= 2x double-buffered native input block
    #                       + ~4 live (TN, C) f32 temporaries.
    per_row_bytes = c * (2 * itemsize + 4 * 4)
    rows = int(0.7 * vmem_limit) // max(1, per_row_bytes)
    rows = max(sub, min(rows, 8192))

    # Keep the grid at >= 2 steps when the batch allows it (v7x has 2 TCs).
    half = -(-n // 2)
    split_cap = -(-half // sub) * sub
    rows = min(rows, split_cap)

    rows = max(sub, (rows // sub) * sub)       # round down to sublane multiple
    n_pad = -(-n // sub) * sub
    rows = min(rows, n_pad)
    return rows, vmem_limit


def log_likelihood_loss(predictions, targets, tile_n=None):
    """mean_i( -log_softmax(predictions, axis=1)[i, targets[i]] )."""
    n, c = predictions.shape
    auto_tile, vmem_limit = _choose_tile_n(n, c, predictions.dtype)
    if tile_n is None:
        tile_n = auto_tile
    else:
        itemsize = jnp.dtype(predictions.dtype).itemsize
        sub = max(8, 32 // max(1, itemsize))
        tile_n = max(sub, -(-int(tile_n) // sub) * sub)

    g = pl.cdiv(n, tile_n)
    tgt2d = targets.astype(jnp.int32).reshape(n, 1)

    partial = pl.pallas_call(
        _make_nll_kernel(n),
        out_shape=jax.ShapeDtypeStruct((g, 128), jnp.float32),
        grid=(g,),
        in_specs=[
            pl.BlockSpec((tile_n, c), lambda i: (i, 0)),   # predictions tile
            pl.BlockSpec((tile_n, 1), lambda i: (i, 0)),   # targets tile
        ],
        out_specs=pl.BlockSpec((1, 128), lambda i: (i, 0)),
        compiler_params=pltpu.CompilerParams(
            dimension_semantics=("parallel",),
            vmem_limit_bytes=vmem_limit,
        ),
    )(predictions, tgt2d)

    # Tiny final reduction over g per-tile partial sums; scale by precomputed 1/N.
    return jnp.sum(partial[:, 0]) * (1.0 / n)


if __name__ == "__main__":
    # --- small f32 case (single tile) ---
    N, C = 8, 128
    k_pred, k_tgt = jax.random.split(jax.random.PRNGKey(0))
    pred = jax.random.normal(k_pred, (N, C), dtype=jnp.float32)
    tgt = jax.random.randint(k_tgt, (N,), 0, C, dtype=jnp.int32)

    loss = log_likelihood_loss(pred, tgt)
    jax.block_until_ready(loss)

    ref = jnp.mean(-jax.nn.log_softmax(pred, axis=1)[jnp.arange(N), tgt])
    assert jnp.allclose(loss, ref, atol=1e-5, rtol=1e-5), (loss, ref)

    # --- multi-tile bf16 case with ragged tail (n % tile_n != 0) ---
    N2, C2 = 20, 256
    k_pred2, k_tgt2 = jax.random.split(jax.random.PRNGKey(1))
    pred2 = jax.random.normal(k_pred2, (N2, C2), dtype=jnp.float32)
    tgt2 = jax.random.randint(k_tgt2, (N2,), 0, C2, dtype=jnp.int32)

    loss2 = log_likelihood_loss(pred2.astype(jnp.bfloat16), tgt2)
    jax.block_until_ready(loss2)

    ref2 = jnp.mean(
        -jax.nn.log_softmax(pred2.astype(jnp.bfloat16).astype(jnp.float32),
                            axis=1)[jnp.arange(N2), tgt2])
    assert jnp.allclose(loss2, ref2, atol=2e-3, rtol=2e-3), (loss2, ref2)

    print("KERNEL_OK")
</pallas_src>

<mosaic_0001>
module attributes {stable_mosaic.version = 11 : i64} {
  func.func @kernel(%arg0: i32, %arg1: memref<8x128xf32, #tpu.memory_space<vmem>>, %arg2: memref<8x1xi32, #tpu.memory_space<vmem>>, %arg3: memref<1x128xf32, #tpu.memory_space<vmem>>) attributes {dimension_semantics = [#tpu.dimension_semantics<parallel>], iteration_bounds = array<i64: 1>, scalar_prefetch = 0 : i64, scratch_operands = 0 : i64, tpu.core_type = #tpu.core_type<tc>, window_params = [{transform_indices = @transform_0, window_bounds = array<i64: 8, 128>}, {transform_indices = @transform_1, window_bounds = array<i64: 8, 1>}, {transform_indices = @transform_2, window_bounds = array<i64: 1, 128>}]} {
    %c0 = arith.constant 0 : index
    %c0_0 = arith.constant 0 : index
    %0 = vector.load %arg1[%c0, %c0_0] : memref<8x128xf32, #tpu.memory_space<vmem>>, vector<8x128xf32>
    %cst = arith.constant dense<0xFF800000> : vector<8xf32>
    %1 = vector.multi_reduction <maximumf>, %0, %cst [1] : vector<8x128xf32> to vector<8xf32>
    %2 = vector.shape_cast %1 : vector<8xf32> to vector<8x1xf32>
    %3 = vector.broadcast %2 : vector<8x1xf32> to vector<8x128xf32>
    %4 = arith.subf %0, %3 : vector<8x128xf32>
    %5 = math.exp %4 : vector<8x128xf32>
    %cst_1 = arith.constant dense<0.000000e+00> : vector<8xf32>
    %6 = vector.multi_reduction <add>, %5, %cst_1 [1] : vector<8x128xf32> to vector<8xf32>
    %7 = vector.shape_cast %6 : vector<8xf32> to vector<8x1xf32>
    %8 = math.log %7 : vector<8x1xf32>
    %9 = arith.addf %2, %8 : vector<8x1xf32>
    %10 = tpu.iota {dimensions = array<i32: 1>} : vector<1x128xi32>
    %c0_2 = arith.constant 0 : index
    %c0_3 = arith.constant 0 : index
    %11 = vector.load %arg2[%c0_2, %c0_3] : memref<8x1xi32, #tpu.memory_space<vmem>>, vector<8x1xi32>
    %12 = vector.broadcast %10 : vector<1x128xi32> to vector<8x128xi32>
    %13 = vector.broadcast %11 : vector<8x1xi32> to vector<8x128xi32>
    %14 = arith.cmpi eq, %12, %13 : vector<8x128xi32>
    %cst_4 = arith.constant 0.000000e+00 : f32
    %15 = vector.broadcast %cst_4 : f32 to vector<8x128xf32>
    %16 = arith.select %14, %0, %15 : vector<8x128xi1>, vector<8x128xf32>
    %cst_5 = arith.constant dense<0.000000e+00> : vector<8xf32>
    %17 = vector.multi_reduction <add>, %16, %cst_5 [1] : vector<8x128xf32> to vector<8xf32>
    %18 = vector.shape_cast %17 : vector<8xf32> to vector<8x1xf32>
    %19 = arith.subf %9, %18 : vector<8x1xf32>
    %c8_i32 = arith.constant 8 : i32
    %20 = arith.muli %arg0, %c8_i32 : i32
    %21 = tpu.iota {dimensions = array<i32: 0>} : vector<8x1xi32>
    %22 = vector.broadcast %20 : i32 to vector<8x1xi32>
    %23 = arith.addi %22, %21 : vector<8x1xi32>
    %c8_i32_6 = arith.constant 8 : i32
    %24 = vector.broadcast %c8_i32_6 : i32 to vector<8x1xi32>
    %25 = arith.cmpi slt, %23, %24 : vector<8x1xi32>
    %cst_7 = arith.constant 0.000000e+00 : f32
    %26 = vector.broadcast %cst_7 : f32 to vector<8x1xf32>
    %27 = arith.select %25, %19, %26 : vector<8x1xi1>, vector<8x1xf32>
    %28 = vector.shape_cast %27 : vector<8x1xf32> to vector<1x8x1xf32>
    %cst_8 = arith.constant dense<0.000000e+00> : vector<1xf32>
    %29 = vector.multi_reduction <add>, %28, %cst_8 [1, 2] : vector<1x8x1xf32> to vector<1xf32>
    %30 = vector.shape_cast %29 : vector<1xf32> to vector<1x1x1xf32>
    %31 = vector.extract %30[0, 0, 0] : f32 from vector<1x1x1xf32>
    %32 = vector.broadcast %31 : f32 to vector<1x128xf32>
    %c0_9 = arith.constant 0 : index
    %c0_10 = arith.constant 0 : index
    %33 = vector.load %arg3[%c0_9, %c0_10] : memref<1x128xf32, #tpu.memory_space<vmem>>, vector<1x128xf32>
    tpu.vector_store %arg3[%c0_9, %c0_10], %32 {strides = array<i32>} : memref<1x128xf32, #tpu.memory_space<vmem>>, vector<1x128xf32>,
    return
  }
  func.func @transform_0(%arg0: i32) -> (i32, i32) {
    %c0_i32 = arith.constant 0 : i32
    %c0_i32_0 = arith.constant 0 : i32
    return %arg0, %c0_i32 : i32, i32
  }
  func.func @transform_1(%arg0: i32) -> (i32, i32) {
    %c0_i32 = arith.constant 0 : i32
    %c0_i32_0 = arith.constant 0 : i32
    return %arg0, %c0_i32 : i32, i32
  }
  func.func @transform_2(%arg0: i32) -> (i32, i32) {
    %c0_i32 = arith.constant 0 : i32
    %c0_i32_0 = arith.constant 0 : i32
    return %arg0, %c0_i32 : i32, i32
  }
}

</mosaic_0001>

<bundles_post_ra>
// kernel: tpu_custom_call.1
= control target key start
LH: loop header
LB: loop body
LE: loop exit
PB: predicated region body
PF: predicated region fallthrough
CT: control target
= control target key end

     0   :  { %s136_s0 = inlined_call_operand.vmem [shape: f32[8,128], index: 0, kind: input, shape index: {}]   ;;  %s137_s1 = inlined_call_operand.vmem [shape: s32[8,1], index: 1, kind: input, shape index: {}]   ;;  %s138_s2 = inlined_call_operand.hbm [shape: f32[1,128], index: 2, kind: output, shape index: {}]  }
   0x1   :  { %v12_v0 = vld [vmem:[%s136_s0] sm:$0xff] }
   0x2   :  { %7 = vsyncpa [#allocation3], 0  ;;  %13 = vmax.xlane.f32.xlu0 %v12_v0  ;;  %v101_v1 = vmov 0   ;;  %v25_v2 = vld [vmem:[%s137_s1] sm:$0xff]  ;;  %v23_v6 = vlaneseq  ;;  %vm41_vm1 = vcmask 7168   ;;  %s102_s0 = smov [#allocation2]  }
   0x3   :  { %72 = vset.pattern.permute.xlu0 %v101_v1  ;;  %s60_s1 = sshll.u32 %s102_s0, 4  ;;  %s61_s1 = int_to_ptr.vmem [resolvable:$true] %s60_s1 }
   0x4   :  { %v24_v7 = vand.u32 127, %v23_v6  ;;  %s77_s14 = scalar_lea.vmem %s61_s1, 16  ;;  %s81_s15 = scalar_lea.vmem %s61_s1, 32 }
   0x5   :  { %p78_p0 = scmp.ne.s32.totalorder %s61_s1, %s77_s14  ;;  %p82_p1 = scmp.lt.s32.totalorder %s61_s1, %s61_s1 }
   0x6   :  { %p83_p2 = scmp.lt.s32.totalorder %s81_s15, %s77_s14 }
   0x8   :  { %p84_p3 = por %p83_p2, %p82_p1 }
   0xa   :  { %p85_p4 = pnand %p84_p3, %p78_p0 }
  0x18   :  { %27 = vperm.xlu0 %72, %v25_v2  }
  0x8f   :  { %v14_v3 = vpop.xlane.xlu0 %13 }
  0x90   :  { %v15_v4 = vsub.f32 %v12_v0, %v14_v3 }
  0x92   :  { %v16_v5 = vmul.f32 1.442695, %v15_v4 }
  0x94   :  { %73 = vpow2.f32 %v16_v5 }
  0x97   :  { %v28_v8 = vpop.permute.xlu0 %27 }
  0x98   :  { %vm29_vm0 = vcmp.eq.s32.totalorder %v24_v7, %v28_v8 }
  0x99   :  { %v30_v10 = vsel %vm29_vm0, %v12_v0, 0.0 }
  0x9e   :  { %v74_v9 = vpop.eup %73 }
  0x9f   :  { %18 = vadd.xlane.f32.xlu1 %v74_v9 }
  0xa3   :  { %31 = vadd.xlane.f32.xlu1 %v30_v10 }
 0x12c   :  { %v19_v11 = vpop.xlane.xlu1 %18 }
 0x12d   :  { %75 = vlog2.f32 %v19_v11 }
 0x130   :  { %v32_v14 = vpop.xlane.xlu1 %31 }
 0x137   :  { %v76_v12 = vpop.eup %75 }
 0x138   :  { %v21_v13 = vmul.f32 0.6931472, %v76_v12 }
 0x13a   :  { %v22_v15 = vadd.f32 %v21_v13, %v14_v3 }
 0x13c   :  { %v33_v16 = vsub.f32 %v22_v15, %v32_v14 }
 0x13e   :  { %v42_v17 = vsel %vm41_vm1, %v33_v16, 0.0 }
 0x13f   :  { %43 = vadd.xlane.f32.xlu1 %v42_v17 }
 0x1cc   :  { %v44_v18 = vpop.xlane.xlu1 %43 }
 0x1cd   :  { %v45_v19 = vrot.slane %v44_v18, 4 }
 0x1cf   :  { %v46_v20 = vadd.f32 %v45_v19, %v44_v18 }
 0x1d1   :  { %v47_v21 = vrot.slane %v46_v20, 2 }
 0x1d3   :  { %v48_v22 = vadd.f32 %v47_v21, %v46_v20 }
 0x1d5   :  { %v49_v23 = vrot.slane %v48_v22, 1 }
 0x1d7   :  { %v50_v24 = vadd.f32 %v49_v23, %v48_v22 }
 0x1d9   :  { %68 = vpush %v50_v24 }
 0x20a   :  { %s69_s13 = spop %68 }
 0x20b   :  { %v52_v25 = vstv %s69_s13 }
 0x20c   :  { %53 = vst [vmem:[#allocation2] sm:$0x1] %v52_v25 }
 0x20d   :  { %88 = shalt.err (!%p85_p4)
}
 0x20e   :  { %s89_s18 = scalar_lea.hbm %s138_s2, 16 }
 0x20f   :  { %p90_p5 = scmp.ne.s32.totalorder %s138_s2, %s89_s18  ;;  %p93_p6 = scmp.lt.u32.totalorder %s89_s18, %s138_s2 }
 0x211   :  { %p95_p7 = pnand %p93_p6, %p90_p5 }
 0x213   :  { %98 = shalt.err (!%p95_p7)
}
 0x214   :  { %63 = dma.vmem_to_hbm [thread:$0]  %s61_s1, 16, %s138_s2, [#allocation3]  }
 0x215   :  { %99 = dma.done.wait [#allocation3], 16  }
 0x216   :  { %100 = vsyncadd [#allocation3], 4294967280 }
 0x217   :  { %67 = vsyncpa [#allocation3], 1 }

</bundles_post_ra>
